<compile_context>
chip_gen: v7x
topology: tpu7x:2x2x1
jax: 0.10.0
libtpu: 0.0.40
codegen_flags: <defaults>
</compile_context>

<pallas_src>
import functools

import jax
import jax.numpy as jnp
from jax.experimental import pallas as pl
from jax.experimental.pallas import tpu as pltpu

LN_EPS = 1e-5


def _layernorm(x, gamma, beta):
    mu = jnp.mean(x, axis=-1, keepdims=True)
    var = jnp.mean((x - mu) ** 2, axis=-1, keepdims=True)
    return (x - mu) * jax.lax.rsqrt(var + LN_EPS) * gamma + beta


def _gelu_exact(x):
    # PyTorch nn.GELU default = exact erf formulation.  (tanh-approx GELU /
    # EUP routing is faster but would break 1e-4 parity with the reference.)
    return 0.5 * x * (1.0 + jax.lax.erf(x / jnp.sqrt(2.0).astype(x.dtype)))


def block_kernel(x_ref, g1_ref, be1_ref, wqkv_ref, wp_ref, bp_ref,
                 g2_ref, be2_ref, w1_ref, b1_ref, w2_ref, b2_ref,
                 o_ref, ocat_ref, *, num_heads, matmul_dtype=jnp.float32):
    bt, N, C = x_ref.shape
    H = num_heads
    D = C // H
    M = bt * N

    cast = lambda t: t.astype(matmul_dtype)      # identity for f32 (default)

    x = x_ref[...].reshape(M, C)                 # merge (batch_tile, N) rows; free

    # ---- Attention branch ---------------------------------------------------
    xn = _layernorm(x, g1_ref[...], be1_ref[...])

    # Single fused QKV matmul: full K = C contraction depth, lane-dense 3C-wide
    # output.  The 1/sqrt(D) scale is pre-folded into the Wq columns.
    qkv = jnp.dot(cast(xn), cast(wqkv_ref[...]),
                  preferred_element_type=jnp.float32)                 # (M, 3C)

    # Per-(batch, head) attention.  Heads live in static lane blocks of qkv;
    # each head's output is stored into the (M, C) scratch at lane offset h*D
    # so the head concat is a plain store and the projection below runs as one
    # full-depth (M, C) @ (C, C) matmul.
    for h in range(H):
        q_h = qkv[:, 0 * C + h * D:0 * C + (h + 1) * D].reshape(bt, N, D)
        k_h = qkv[:, 1 * C + h * D:1 * C + (h + 1) * D].reshape(bt, N, D)
        v_h = qkv[:, 2 * C + h * D:2 * C + (h + 1) * D].reshape(bt, N, D)

        s = jnp.einsum('bnd,bmd->bnm', cast(q_h), cast(k_h),
                       preferred_element_type=jnp.float32)            # (bt, N, N)
        s = s - jnp.max(s, axis=-1, keepdims=True)
        p = jnp.exp(s)
        # Exact reciprocal keeps 1e-4 parity; approx=True (EUP vrcp) has
        # ~bf16-level relative error and was deliberately not adopted.
        p = p * pl.reciprocal(jnp.sum(p, axis=-1, keepdims=True))
        o_h = jnp.einsum('bnm,bmd->bnd', cast(p), cast(v_h),
                         preferred_element_type=jnp.float32)          # (bt, N, D)
        ocat_ref[:, h * D:(h + 1) * D] = o_h.reshape(M, D)

    attn = jnp.dot(cast(ocat_ref[...]), cast(wp_ref[...]),
                   preferred_element_type=jnp.float32) + bp_ref[...]  # (M, C)

    x1 = x + attn                                                     # residual 1

    # ---- MLP branch ----------------------------------------------------------
    xn2 = _layernorm(x1, g2_ref[...], be2_ref[...])
    hid = jnp.dot(cast(xn2), cast(w1_ref[...]),
                  preferred_element_type=jnp.float32) + b1_ref[...]
    hid = _gelu_exact(hid)
    y = jnp.dot(cast(hid), cast(w2_ref[...]),
                preferred_element_type=jnp.float32) + b2_ref[...]

    o_ref[...] = (x1 + y).reshape(bt, N, C)                           # residual 2


def prepare_params(params, *, num_heads):
    """One-time parameter preparation (hoisted out of the per-call hot path):
    fold 1/sqrt(D) into the Wq columns of the fused qkv weight and lay out the
    vector params as (1, dim) lane-oriented rows."""
    C = params["g1"].shape[0]
    D = C // num_heads
    scale = jnp.float32(D ** (-0.5))
    wqkv = params["wqkv"].astype(jnp.float32)
    wqkv = jnp.concatenate([wqkv[:, :C] * scale, wqkv[:, C:]], axis=1)
    row = lambda v: v.astype(jnp.float32).reshape(1, -1)
    return {
        "wqkv": wqkv,
        "wproj": params["wproj"].astype(jnp.float32),
        "w1": params["w1"].astype(jnp.float32),
        "w2": params["w2"].astype(jnp.float32),
        "g1": row(params["g1"]), "be1": row(params["be1"]),
        "g2": row(params["g2"]), "be2": row(params["be2"]),
        "bproj": row(params["bproj"]),
        "b1": row(params["b1"]), "b2": row(params["b2"]),
    }


def _per_step_vmem_bytes(batch_tile, N, C, Hm, H):
    f32 = 4
    M = batch_tile * N
    weights = 3 * C * C + C * C + C * Hm + Hm * C + 6 * C + Hm
    acts = (2 * 2 * M * C          # double-buffered x / out tiles
            + M * 3 * C            # fused qkv
            + M * C                # head-concat scratch
            + 2 * M * Hm           # MLP hidden (pre/post GELU)
            + 6 * M * C            # xn / x1 / attn / y temporaries
            + H * batch_tile * N * N)
    return f32 * (weights + acts)


_WEIGHT_KEYS = ("g1", "be1", "wqkv", "wproj", "bproj",
                "g2", "be2", "w1", "b1", "w2", "b2")


def block_forward(x, prepared, *, num_heads, batch_tile=None,
                  matmul_dtype=jnp.float32,
                  vmem_budget_bytes=24 * 1024 * 1024):
    B, N, C = x.shape
    Hm = prepared["w1"].shape[1]

    if batch_tile is None:
        batch_tile = 1
        for cand in range(B, 0, -1):
            if B % cand == 0 and _per_step_vmem_bytes(
                    cand, N, C, Hm, num_heads) <= vmem_budget_bytes:
                batch_tile = cand
                break
    assert B % batch_tile == 0
    grid = (B // batch_tile,)

    def resident(a):
        nd = a.ndim
        return pl.BlockSpec(a.shape, lambda i, _nd=nd: (0,) * _nd)

    x_spec = pl.BlockSpec((batch_tile, N, C), lambda i: (i, 0, 0))

    # Advisory cost estimate so XLA schedules surrounding ops correctly.
    M = B * N
    flops = (2 * M * C * (3 * C)           # fused qkv
             + 4 * B * N * N * C           # scores + PV
             + 2 * M * C * C               # output projection
             + 4 * M * C * Hm)             # fc1 + fc2
    transcendentals = B * num_heads * N * N + M * Hm + 2 * M
    weight_bytes = 4 * sum(int(prepared[k].size) for k in _WEIGHT_KEYS)
    bytes_accessed = 4 * 2 * M * C + weight_bytes

    vmem_limit = int(min(max(2 * _per_step_vmem_bytes(batch_tile, N, C, Hm, num_heads),
                             16 * 1024 * 1024),
                         60 * 1024 * 1024))   # stay under v7x's 64 MiB physical

    kernel = functools.partial(block_kernel, num_heads=num_heads,
                               matmul_dtype=matmul_dtype)

    out = pl.pallas_call(
        kernel,
        out_shape=jax.ShapeDtypeStruct((B, N, C), jnp.float32),
        grid=grid,
        in_specs=[x_spec] + [resident(prepared[k]) for k in _WEIGHT_KEYS],
        out_specs=x_spec,
        scratch_shapes=[pltpu.VMEM((batch_tile * N, C), jnp.float32)],
        compiler_params=pltpu.CompilerParams(
            dimension_semantics=("parallel",),      # v7x: use both TensorCores
            vmem_limit_bytes=vmem_limit),
        cost_estimate=pl.CostEstimate(
            flops=int(flops), transcendentals=int(transcendentals),
            bytes_accessed=int(bytes_accessed)),
    )(x, *(prepared[k] for k in _WEIGHT_KEYS))
    return out


def reference_forward(x, p, *, num_heads):
    # Pure-JAX reference (mirrors the PyTorch module, eval mode).
    B, N, C = x.shape
    D = C // num_heads
    scale = D ** (-0.5)

    xn = _layernorm(x, p["g1"], p["be1"])
    qkv = xn @ p["wqkv"]                                      # (B, N, 3C)
    qkv = qkv.reshape(B, N, 3, num_heads, D).transpose(2, 0, 3, 1, 4)
    q, k, v = qkv[0], qkv[1], qkv[2]                          # (B, H, N, D)
    attn = (q @ jnp.swapaxes(k, -2, -1)) * scale
    attn = jax.nn.softmax(attn, axis=-1)
    o = (attn @ v).transpose(0, 2, 1, 3).reshape(B, N, C)
    o = o @ p["wproj"] + p["bproj"]
    x1 = x + o

    xn2 = _layernorm(x1, p["g2"], p["be2"])
    h = _gelu_exact(xn2 @ p["w1"] + p["b1"])
    return x1 + h @ p["w2"] + p["b2"]


def make_params(key, dim, num_heads, mlp_ratio):
    Hm = int(dim * mlp_ratio)
    ks = jax.random.split(key, 6)
    f32 = jnp.float32
    # Weights stored already transposed to (in, out) so forward does x @ W.
    return {
        "g1": 1.0 + 0.01 * jnp.arange(dim, dtype=f32),
        "be1": 0.01 * jnp.arange(dim, dtype=f32),
        "wqkv": 0.05 * jax.random.normal(ks[0], (dim, 3 * dim), f32),
        "wproj": 0.05 * jax.random.normal(ks[1], (dim, dim), f32),
        "bproj": 0.05 * jax.random.normal(ks[2], (dim,), f32),
        "g2": 1.0 - 0.01 * jnp.arange(dim, dtype=f32),
        "be2": -0.01 * jnp.arange(dim, dtype=f32),
        "w1": 0.05 * jax.random.normal(ks[3], (dim, Hm), f32),
        "b1": 0.05 * jax.random.normal(ks[4], (Hm,), f32),
        "w2": 0.05 * jax.random.normal(ks[5], (Hm, dim), f32),
        "b2": jnp.zeros((dim,), f32),
    }


if __name__ == "__main__":
    B, N, C = 2, 8, 32
    num_heads = 4
    mlp_ratio = 4.0

    key = jax.random.PRNGKey(0)
    kx, kp = jax.random.split(key)
    x = jax.random.normal(kx, (B, N, C), jnp.float32)
    params = make_params(kp, C, num_heads, mlp_ratio)

    # One-time weight prep (scale fold + layout), outside the hot path.
    prepared = prepare_params(params, num_heads=num_heads)

    # batch_tile=1 -> grid=(2,): exercises the pipelined, parallel grid.
    fwd = jax.jit(functools.partial(block_forward, num_heads=num_heads,
                                    batch_tile=1))
    out = jax.block_until_ready(fwd(x, prepared))

    ref = reference_forward(x, params, num_heads=num_heads)
    assert out.shape == (B, N, C)
    assert jnp.allclose(out, ref, atol=1e-4, rtol=1e-4), \
        f"max err {jnp.max(jnp.abs(out - ref))}"

    print("KERNEL_OK")
</pallas_src>

<mosaic_0001>
module attributes {stable_mosaic.version = 11 : i64} {
  func.func @block_kernel(%arg0: i32, %arg1: memref<1x8x32xf32, #tpu.memory_space<vmem>>, %arg2: memref<1x32xf32, #tpu.memory_space<vmem>>, %arg3: memref<1x32xf32, #tpu.memory_space<vmem>>, %arg4: memref<32x96xf32, #tpu.memory_space<vmem>>, %arg5: memref<32x32xf32, #tpu.memory_space<vmem>>, %arg6: memref<1x32xf32, #tpu.memory_space<vmem>>, %arg7: memref<1x32xf32, #tpu.memory_space<vmem>>, %arg8: memref<1x32xf32, #tpu.memory_space<vmem>>, %arg9: memref<32x128xf32, #tpu.memory_space<vmem>>, %arg10: memref<1x128xf32, #tpu.memory_space<vmem>>, %arg11: memref<128x32xf32, #tpu.memory_space<vmem>>, %arg12: memref<1x32xf32, #tpu.memory_space<vmem>>, %arg13: memref<1x8x32xf32, #tpu.memory_space<vmem>>, %arg14: memref<8x32xf32, #tpu.memory_space<vmem>>) attributes {dimension_semantics = [#tpu.dimension_semantics<parallel>], iteration_bounds = array<i64: 2>, scalar_prefetch = 0 : i64, scratch_operands = 1 : i64, tpu.core_type = #tpu.core_type<tc>, window_params = [{transform_indices = @transform_0, window_bounds = array<i64: 1, 8, 32>}, {pipeline_mode = #tpu.pipeline_mode<synchronous>, transform_indices = @transform_1, window_bounds = array<i64: 1, 32>}, {pipeline_mode = #tpu.pipeline_mode<synchronous>, transform_indices = @transform_2, window_bounds = array<i64: 1, 32>}, {pipeline_mode = #tpu.pipeline_mode<synchronous>, transform_indices = @transform_3, window_bounds = array<i64: 32, 96>}, {pipeline_mode = #tpu.pipeline_mode<synchronous>, transform_indices = @transform_4, window_bounds = array<i64: 32, 32>}, {pipeline_mode = #tpu.pipeline_mode<synchronous>, transform_indices = @transform_5, window_bounds = array<i64: 1, 32>}, {pipeline_mode = #tpu.pipeline_mode<synchronous>, transform_indices = @transform_6, window_bounds = array<i64: 1, 32>}, {pipeline_mode = #tpu.pipeline_mode<synchronous>, transform_indices = @transform_7, window_bounds = array<i64: 1, 32>}, {pipeline_mode = #tpu.pipeline_mode<synchronous>, transform_indices = @transform_8, window_bounds = array<i64: 32, 128>}, {pipeline_mode = #tpu.pipeline_mode<synchronous>, transform_indices = @transform_9, window_bounds = array<i64: 1, 128>}, {pipeline_mode = #tpu.pipeline_mode<synchronous>, transform_indices = @transform_10, window_bounds = array<i64: 128, 32>}, {pipeline_mode = #tpu.pipeline_mode<synchronous>, transform_indices = @transform_11, window_bounds = array<i64: 1, 32>}, {transform_indices = @transform_12, window_bounds = array<i64: 1, 8, 32>}]} {
    %c0 = arith.constant 0 : index
    %c0_0 = arith.constant 0 : index
    %c0_1 = arith.constant 0 : index
    %0 = vector.load %arg1[%c0, %c0_0, %c0_1] : memref<1x8x32xf32, #tpu.memory_space<vmem>>, vector<1x8x32xf32>
    %1 = vector.shape_cast %0 : vector<1x8x32xf32> to vector<8x32xf32>
    %c0_2 = arith.constant 0 : index
    %c0_3 = arith.constant 0 : index
    %2 = vector.load %arg2[%c0_2, %c0_3] : memref<1x32xf32, #tpu.memory_space<vmem>>, vector<1x32xf32>
    %c0_4 = arith.constant 0 : index
    %c0_5 = arith.constant 0 : index
    %3 = vector.load %arg3[%c0_4, %c0_5] : memref<1x32xf32, #tpu.memory_space<vmem>>, vector<1x32xf32>
    %cst = arith.constant dense<0.000000e+00> : vector<8xf32>
    %4 = vector.multi_reduction <add>, %1, %cst [1] : vector<8x32xf32> to vector<8xf32>
    %5 = vector.shape_cast %4 : vector<8xf32> to vector<8x1xf32>
    %cst_6 = arith.constant 3.200000e+01 : f32
    %6 = vector.broadcast %cst_6 : f32 to vector<8x1xf32>
    %7 = arith.divf %5, %6 : vector<8x1xf32>
    %8 = vector.broadcast %7 : vector<8x1xf32> to vector<8x32xf32>
    %9 = arith.subf %1, %8 : vector<8x32xf32>
    %10 = arith.mulf %9, %9 : vector<8x32xf32>
    %cst_7 = arith.constant dense<0.000000e+00> : vector<8xf32>
    %11 = vector.multi_reduction <add>, %10, %cst_7 [1] : vector<8x32xf32> to vector<8xf32>
    %12 = vector.shape_cast %11 : vector<8xf32> to vector<8x1xf32>
    %cst_8 = arith.constant 3.200000e+01 : f32
    %13 = vector.broadcast %cst_8 : f32 to vector<8x1xf32>
    %14 = arith.divf %12, %13 : vector<8x1xf32>
    %15 = vector.broadcast %7 : vector<8x1xf32> to vector<8x32xf32>
    %16 = arith.subf %1, %15 : vector<8x32xf32>
    %cst_9 = arith.constant 9.99999974E-6 : f32
    %17 = vector.broadcast %cst_9 : f32 to vector<8x1xf32>
    %18 = arith.addf %14, %17 : vector<8x1xf32>
    %19 = math.rsqrt %18 : vector<8x1xf32>
    %20 = vector.broadcast %19 : vector<8x1xf32> to vector<8x32xf32>
    %21 = arith.mulf %16, %20 : vector<8x32xf32>
    %22 = vector.broadcast %2 : vector<1x32xf32> to vector<8x32xf32>
    %23 = arith.mulf %21, %22 : vector<8x32xf32>
    %24 = vector.broadcast %3 : vector<1x32xf32> to vector<8x32xf32>
    %25 = arith.addf %23, %24 : vector<8x32xf32>
    %c0_10 = arith.constant 0 : index
    %c0_11 = arith.constant 0 : index
    %26 = vector.load %arg4[%c0_10, %c0_11] : memref<32x96xf32, #tpu.memory_space<vmem>>, vector<32x96xf32>
    %cst_12 = arith.constant dense<0.000000e+00> : vector<8x96xf32>
    %27 = tpu.matmul %25, %26, %cst_12 {dimension_numbers = #tpu.dot_dimension_numbers<[1], [0], [0], [1], [0, 0, 1, 1], [], []>} : vector<8x32xf32>, vector<32x96xf32>, vector<8x96xf32> -> vector<8x96xf32>
    %28 = vector.extract_strided_slice %27 {offsets = [0, 0], sizes = [8, 8], strides = [1, 1]} : vector<8x96xf32> to vector<8x8xf32>
    %29 = vector.shape_cast %28 : vector<8x8xf32> to vector<1x8x8xf32>
    %30 = vector.extract_strided_slice %27 {offsets = [0, 32], sizes = [8, 8], strides = [1, 1]} : vector<8x96xf32> to vector<8x8xf32>
    %31 = vector.shape_cast %30 : vector<8x8xf32> to vector<1x8x8xf32>
    %32 = vector.extract_strided_slice %27 {offsets = [0, 64], sizes = [8, 8], strides = [1, 1]} : vector<8x96xf32> to vector<8x8xf32>
    %33 = vector.shape_cast %32 : vector<8x8xf32> to vector<1x8x8xf32>
    "tpu.trace_start"() <{level = 10 : i32, message = "bnd,bmd->bnm"}> : () -> ()
    %cst_13 = arith.constant dense<0.000000e+00> : vector<1x8x8xf32>
    %34 = tpu.matmul %29, %31, %cst_13 {dimension_numbers = #tpu.dot_dimension_numbers<[2], [2], [1], [1], [0, 0, 0, 1, 1, 1], [0], [0]>} : vector<1x8x8xf32>, vector<1x8x8xf32>, vector<1x8x8xf32> -> vector<1x8x8xf32>
    "tpu.trace_stop"() : () -> ()
    %cst_14 = arith.constant dense<0xFF800000> : vector<1x8xf32>
    %35 = vector.multi_reduction <maximumf>, %34, %cst_14 [2] : vector<1x8x8xf32> to vector<1x8xf32>
    %36 = vector.shape_cast %35 : vector<1x8xf32> to vector<1x8x1xf32>
    %37 = vector.broadcast %36 : vector<1x8x1xf32> to vector<1x8x8xf32>
    %38 = arith.subf %34, %37 : vector<1x8x8xf32>
    %39 = math.exp %38 : vector<1x8x8xf32>
    %cst_15 = arith.constant dense<0.000000e+00> : vector<1x8xf32>
    %40 = vector.multi_reduction <add>, %39, %cst_15 [2] : vector<1x8x8xf32> to vector<1x8xf32>
    %41 = vector.shape_cast %40 : vector<1x8xf32> to vector<1x8x1xf32>
    %42 = tpu.reciprocal %41 : vector<1x8x1xf32> -> vector<1x8x1xf32>
    %43 = vector.broadcast %42 : vector<1x8x1xf32> to vector<1x8x8xf32>
    %44 = arith.mulf %39, %43 : vector<1x8x8xf32>
    "tpu.trace_start"() <{level = 10 : i32, message = "bnm,bmd->bnd"}> : () -> ()
    %cst_16 = arith.constant dense<0.000000e+00> : vector<1x8x8xf32>
    %45 = tpu.matmul %44, %33, %cst_16 {dimension_numbers = #tpu.dot_dimension_numbers<[2], [1], [1], [2], [0, 0, 0, 1, 1, 2], [0], [0]>} : vector<1x8x8xf32>, vector<1x8x8xf32>, vector<1x8x8xf32> -> vector<1x8x8xf32>
    "tpu.trace_stop"() : () -> ()
    %46 = vector.shape_cast %45 : vector<1x8x8xf32> to vector<8x8xf32>
    %c0_17 = arith.constant 0 : index
    %c0_18 = arith.constant 0 : index
    %47 = vector.load %arg14[%c0_17, %c0_18] : memref<8x32xf32, #tpu.memory_space<vmem>>, vector<8x8xf32>
    tpu.vector_store %arg14[%c0_17, %c0_18], %46 {strides = array<i32>} : memref<8x32xf32, #tpu.memory_space<vmem>>, vector<8x8xf32>,
    %48 = vector.extract_strided_slice %27 {offsets = [0, 8], sizes = [8, 8], strides = [1, 1]} : vector<8x96xf32> to vector<8x8xf32>
    %49 = vector.shape_cast %48 : vector<8x8xf32> to vector<1x8x8xf32>
    %50 = vector.extract_strided_slice %27 {offsets = [0, 40], sizes = [8, 8], strides = [1, 1]} : vector<8x96xf32> to vector<8x8xf32>
    %51 = vector.shape_cast %50 : vector<8x8xf32> to vector<1x8x8xf32>
    %52 = vector.extract_strided_slice %27 {offsets = [0, 72], sizes = [8, 8], strides = [1, 1]} : vector<8x96xf32> to vector<8x8xf32>
    %53 = vector.shape_cast %52 : vector<8x8xf32> to vector<1x8x8xf32>
    "tpu.trace_start"() <{level = 10 : i32, message = "bnd,bmd->bnm"}> : () -> ()
    %cst_19 = arith.constant dense<0.000000e+00> : vector<1x8x8xf32>
    %54 = tpu.matmul %49, %51, %cst_19 {dimension_numbers = #tpu.dot_dimension_numbers<[2], [2], [1], [1], [0, 0, 0, 1, 1, 1], [0], [0]>} : vector<1x8x8xf32>, vector<1x8x8xf32>, vector<1x8x8xf32> -> vector<1x8x8xf32>
    "tpu.trace_stop"() : () -> ()
    %cst_20 = arith.constant dense<0xFF800000> : vector<1x8xf32>
    %55 = vector.multi_reduction <maximumf>, %54, %cst_20 [2] : vector<1x8x8xf32> to vector<1x8xf32>
    %56 = vector.shape_cast %55 : vector<1x8xf32> to vector<1x8x1xf32>
    %57 = vector.broadcast %56 : vector<1x8x1xf32> to vector<1x8x8xf32>
    %58 = arith.subf %54, %57 : vector<1x8x8xf32>
    %59 = math.exp %58 : vector<1x8x8xf32>
    %cst_21 = arith.constant dense<0.000000e+00> : vector<1x8xf32>
    %60 = vector.multi_reduction <add>, %59, %cst_21 [2] : vector<1x8x8xf32> to vector<1x8xf32>
    %61 = vector.shape_cast %60 : vector<1x8xf32> to vector<1x8x1xf32>
    %62 = tpu.reciprocal %61 : vector<1x8x1xf32> -> vector<1x8x1xf32>
    %63 = vector.broadcast %62 : vector<1x8x1xf32> to vector<1x8x8xf32>
    %64 = arith.mulf %59, %63 : vector<1x8x8xf32>
    "tpu.trace_start"() <{level = 10 : i32, message = "bnm,bmd->bnd"}> : () -> ()
    %cst_22 = arith.constant dense<0.000000e+00> : vector<1x8x8xf32>
    %65 = tpu.matmul %64, %53, %cst_22 {dimension_numbers = #tpu.dot_dimension_numbers<[2], [1], [1], [2], [0, 0, 0, 1, 1, 2], [0], [0]>} : vector<1x8x8xf32>, vector<1x8x8xf32>, vector<1x8x8xf32> -> vector<1x8x8xf32>
    "tpu.trace_stop"() : () -> ()
    %66 = vector.shape_cast %65 : vector<1x8x8xf32> to vector<8x8xf32>
    %c0_23 = arith.constant 0 : index
    %c8 = arith.constant 8 : index
    %67 = vector.load %arg14[%c0_23, %c8] : memref<8x32xf32, #tpu.memory_space<vmem>>, vector<8x8xf32>
    tpu.vector_store %arg14[%c0_23, %c8], %66 {strides = array<i32>} : memref<8x32xf32, #tpu.memory_space<vmem>>, vector<8x8xf32>,
    %68 = vector.extract_strided_slice %27 {offsets = [0, 16], sizes = [8, 8], strides = [1, 1]} : vector<8x96xf32> to vector<8x8xf32>
    %69 = vector.shape_cast %68 : vector<8x8xf32> to vector<1x8x8xf32>
    %70 = vector.extract_strided_slice %27 {offsets = [0, 48], sizes = [8, 8], strides = [1, 1]} : vector<8x96xf32> to vector<8x8xf32>
    %71 = vector.shape_cast %70 : vector<8x8xf32> to vector<1x8x8xf32>
    %72 = vector.extract_strided_slice %27 {offsets = [0, 80], sizes = [8, 8], strides = [1, 1]} : vector<8x96xf32> to vector<8x8xf32>
    %73 = vector.shape_cast %72 : vector<8x8xf32> to vector<1x8x8xf32>
    "tpu.trace_start"() <{level = 10 : i32, message = "bnd,bmd->bnm"}> : () -> ()
    %cst_24 = arith.constant dense<0.000000e+00> : vector<1x8x8xf32>
    %74 = tpu.matmul %69, %71, %cst_24 {dimension_numbers = #tpu.dot_dimension_numbers<[2], [2], [1], [1], [0, 0, 0, 1, 1, 1], [0], [0]>} : vector<1x8x8xf32>, vector<1x8x8xf32>, vector<1x8x8xf32> -> vector<1x8x8xf32>
    "tpu.trace_stop"() : () -> ()
    %cst_25 = arith.constant dense<0xFF800000> : vector<1x8xf32>
    %75 = vector.multi_reduction <maximumf>, %74, %cst_25 [2] : vector<1x8x8xf32> to vector<1x8xf32>
    %76 = vector.shape_cast %75 : vector<1x8xf32> to vector<1x8x1xf32>
    %77 = vector.broadcast %76 : vector<1x8x1xf32> to vector<1x8x8xf32>
    %78 = arith.subf %74, %77 : vector<1x8x8xf32>
    %79 = math.exp %78 : vector<1x8x8xf32>
    %cst_26 = arith.constant dense<0.000000e+00> : vector<1x8xf32>
    %80 = vector.multi_reduction <add>, %79, %cst_26 [2] : vector<1x8x8xf32> to vector<1x8xf32>
    %81 = vector.shape_cast %80 : vector<1x8xf32> to vector<1x8x1xf32>
    %82 = tpu.reciprocal %81 : vector<1x8x1xf32> -> vector<1x8x1xf32>
    %83 = vector.broadcast %82 : vector<1x8x1xf32> to vector<1x8x8xf32>
    %84 = arith.mulf %79, %83 : vector<1x8x8xf32>
    "tpu.trace_start"() <{level = 10 : i32, message = "bnm,bmd->bnd"}> : () -> ()
    %cst_27 = arith.constant dense<0.000000e+00> : vector<1x8x8xf32>
    %85 = tpu.matmul %84, %73, %cst_27 {dimension_numbers = #tpu.dot_dimension_numbers<[2], [1], [1], [2], [0, 0, 0, 1, 1, 2], [0], [0]>} : vector<1x8x8xf32>, vector<1x8x8xf32>, vector<1x8x8xf32> -> vector<1x8x8xf32>
    "tpu.trace_stop"() : () -> ()
    %86 = vector.shape_cast %85 : vector<1x8x8xf32> to vector<8x8xf32>
    %c0_28 = arith.constant 0 : index
    %c16 = arith.constant 16 : index
    %87 = vector.load %arg14[%c0_28, %c16] : memref<8x32xf32, #tpu.memory_space<vmem>>, vector<8x8xf32>
    tpu.vector_store %arg14[%c0_28, %c16], %86 {strides = array<i32>} : memref<8x32xf32, #tpu.memory_space<vmem>>, vector<8x8xf32>,
    %88 = vector.extract_strided_slice %27 {offsets = [0, 24], sizes = [8, 8], strides = [1, 1]} : vector<8x96xf32> to vector<8x8xf32>
    %89 = vector.shape_cast %88 : vector<8x8xf32> to vector<1x8x8xf32>
    %90 = vector.extract_strided_slice %27 {offsets = [0, 56], sizes = [8, 8], strides = [1, 1]} : vector<8x96xf32> to vector<8x8xf32>
    %91 = vector.shape_cast %90 : vector<8x8xf32> to vector<1x8x8xf32>
    %92 = vector.extract_strided_slice %27 {offsets = [0, 88], sizes = [8, 8], strides = [1, 1]} : vector<8x96xf32> to vector<8x8xf32>
    %93 = vector.shape_cast %92 : vector<8x8xf32> to vector<1x8x8xf32>
    "tpu.trace_start"() <{level = 10 : i32, message = "bnd,bmd->bnm"}> : () -> ()
    %cst_29 = arith.constant dense<0.000000e+00> : vector<1x8x8xf32>
    %94 = tpu.matmul %89, %91, %cst_29 {dimension_numbers = #tpu.dot_dimension_numbers<[2], [2], [1], [1], [0, 0, 0, 1, 1, 1], [0], [0]>} : vector<1x8x8xf32>, vector<1x8x8xf32>, vector<1x8x8xf32> -> vector<1x8x8xf32>
    "tpu.trace_stop"() : () -> ()
    %cst_30 = arith.constant dense<0xFF800000> : vector<1x8xf32>
    %95 = vector.multi_reduction <maximumf>, %94, %cst_30 [2] : vector<1x8x8xf32> to vector<1x8xf32>
    %96 = vector.shape_cast %95 : vector<1x8xf32> to vector<1x8x1xf32>
    %97 = vector.broadcast %96 : vector<1x8x1xf32> to vector<1x8x8xf32>
    %98 = arith.subf %94, %97 : vector<1x8x8xf32>
    %99 = math.exp %98 : vector<1x8x8xf32>
    %cst_31 = arith.constant dense<0.000000e+00> : vector<1x8xf32>
    %100 = vector.multi_reduction <add>, %99, %cst_31 [2] : vector<1x8x8xf32> to vector<1x8xf32>
    %101 = vector.shape_cast %100 : vector<1x8xf32> to vector<1x8x1xf32>
    %102 = tpu.reciprocal %101 : vector<1x8x1xf32> -> vector<1x8x1xf32>
    %103 = vector.broadcast %102 : vector<1x8x1xf32> to vector<1x8x8xf32>
    %104 = arith.mulf %99, %103 : vector<1x8x8xf32>
    "tpu.trace_start"() <{level = 10 : i32, message = "bnm,bmd->bnd"}> : () -> ()
    %cst_32 = arith.constant dense<0.000000e+00> : vector<1x8x8xf32>
    %105 = tpu.matmul %104, %93, %cst_32 {dimension_numbers = #tpu.dot_dimension_numbers<[2], [1], [1], [2], [0, 0, 0, 1, 1, 2], [0], [0]>} : vector<1x8x8xf32>, vector<1x8x8xf32>, vector<1x8x8xf32> -> vector<1x8x8xf32>
    "tpu.trace_stop"() : () -> ()
    %106 = vector.shape_cast %105 : vector<1x8x8xf32> to vector<8x8xf32>
    %c0_33 = arith.constant 0 : index
    %c24 = arith.constant 24 : index
    %107 = vector.load %arg14[%c0_33, %c24] : memref<8x32xf32, #tpu.memory_space<vmem>>, vector<8x8xf32>
    tpu.vector_store %arg14[%c0_33, %c24], %106 {strides = array<i32>} : memref<8x32xf32, #tpu.memory_space<vmem>>, vector<8x8xf32>,
    %c0_34 = arith.constant 0 : index
    %c0_35 = arith.constant 0 : index
    %108 = vector.load %arg14[%c0_34, %c0_35] : memref<8x32xf32, #tpu.memory_space<vmem>>, vector<8x32xf32>
    %c0_36 = arith.constant 0 : index
    %c0_37 = arith.constant 0 : index
    %109 = vector.load %arg5[%c0_36, %c0_37] : memref<32x32xf32, #tpu.memory_space<vmem>>, vector<32x32xf32>
    %cst_38 = arith.constant dense<0.000000e+00> : vector<8x32xf32>
    %110 = tpu.matmul %108, %109, %cst_38 {dimension_numbers = #tpu.dot_dimension_numbers<[1], [0], [0], [1], [0, 0, 1, 1], [], []>} : vector<8x32xf32>, vector<32x32xf32>, vector<8x32xf32> -> vector<8x32xf32>
    %c0_39 = arith.constant 0 : index
    %c0_40 = arith.constant 0 : index
    %111 = vector.load %arg6[%c0_39, %c0_40] : memref<1x32xf32, #tpu.memory_space<vmem>>, vector<1x32xf32>
    %112 = vector.broadcast %111 : vector<1x32xf32> to vector<8x32xf32>
    %113 = arith.addf %110, %112 : vector<8x32xf32>
    %114 = arith.addf %1, %113 : vector<8x32xf32>
    %c0_41 = arith.constant 0 : index
    %c0_42 = arith.constant 0 : index
    %115 = vector.load %arg7[%c0_41, %c0_42] : memref<1x32xf32, #tpu.memory_space<vmem>>, vector<1x32xf32>
    %c0_43 = arith.constant 0 : index
    %c0_44 = arith.constant 0 : index
    %116 = vector.load %arg8[%c0_43, %c0_44] : memref<1x32xf32, #tpu.memory_space<vmem>>, vector<1x32xf32>
    %cst_45 = arith.constant dense<0.000000e+00> : vector<8xf32>
    %117 = vector.multi_reduction <add>, %114, %cst_45 [1] : vector<8x32xf32> to vector<8xf32>
    %118 = vector.shape_cast %117 : vector<8xf32> to vector<8x1xf32>
    %cst_46 = arith.constant 3.200000e+01 : f32
    %119 = vector.broadcast %cst_46 : f32 to vector<8x1xf32>
    %120 = arith.divf %118, %119 : vector<8x1xf32>
    %121 = vector.broadcast %120 : vector<8x1xf32> to vector<8x32xf32>
    %122 = arith.subf %114, %121 : vector<8x32xf32>
    %123 = arith.mulf %122, %122 : vector<8x32xf32>
    %cst_47 = arith.constant dense<0.000000e+00> : vector<8xf32>
    %124 = vector.multi_reduction <add>, %123, %cst_47 [1] : vector<8x32xf32> to vector<8xf32>
    %125 = vector.shape_cast %124 : vector<8xf32> to vector<8x1xf32>
    %cst_48 = arith.constant 3.200000e+01 : f32
    %126 = vector.broadcast %cst_48 : f32 to vector<8x1xf32>
    %127 = arith.divf %125, %126 : vector<8x1xf32>
    %128 = vector.broadcast %120 : vector<8x1xf32> to vector<8x32xf32>
    %129 = arith.subf %114, %128 : vector<8x32xf32>
    %cst_49 = arith.constant 9.99999974E-6 : f32
    %130 = vector.broadcast %cst_49 : f32 to vector<8x1xf32>
    %131 = arith.addf %127, %130 : vector<8x1xf32>
    %132 = math.rsqrt %131 : vector<8x1xf32>
    %133 = vector.broadcast %132 : vector<8x1xf32> to vector<8x32xf32>
    %134 = arith.mulf %129, %133 : vector<8x32xf32>
    %135 = vector.broadcast %115 : vector<1x32xf32> to vector<8x32xf32>
    %136 = arith.mulf %134, %135 : vector<8x32xf32>
    %137 = vector.broadcast %116 : vector<1x32xf32> to vector<8x32xf32>
    %138 = arith.addf %136, %137 : vector<8x32xf32>
    %c0_50 = arith.constant 0 : index
    %c0_51 = arith.constant 0 : index
    %139 = vector.load %arg9[%c0_50, %c0_51] : memref<32x128xf32, #tpu.memory_space<vmem>>, vector<32x128xf32>
    %cst_52 = arith.constant dense<0.000000e+00> : vector<8x128xf32>
    %140 = tpu.matmul %138, %139, %cst_52 {dimension_numbers = #tpu.dot_dimension_numbers<[1], [0], [0], [1], [0, 0, 1, 1], [], []>} : vector<8x32xf32>, vector<32x128xf32>, vector<8x128xf32> -> vector<8x128xf32>
    %c0_53 = arith.constant 0 : index
    %c0_54 = arith.constant 0 : index
    %141 = vector.load %arg10[%c0_53, %c0_54] : memref<1x128xf32, #tpu.memory_space<vmem>>, vector<1x128xf32>
    %142 = vector.broadcast %141 : vector<1x128xf32> to vector<8x128xf32>
    %143 = arith.addf %140, %142 : vector<8x128xf32>
    %cst_55 = arith.constant 5.000000e-01 : f32
    %144 = vector.broadcast %cst_55 : f32 to vector<8x128xf32>
    %145 = arith.mulf %144, %143 : vector<8x128xf32>
    %cst_56 = arith.constant 2.000000e+00 : f32
    %146 = math.sqrt %cst_56 : f32
    %147 = vector.broadcast %146 : f32 to vector<8x128xf32>
    %148 = arith.divf %143, %147 : vector<8x128xf32>
    %149 = math.erf %148 : vector<8x128xf32>
    %cst_57 = arith.constant 1.000000e+00 : f32
    %150 = vector.broadcast %cst_57 : f32 to vector<8x128xf32>
    %151 = arith.addf %150, %149 : vector<8x128xf32>
    %152 = arith.mulf %145, %151 : vector<8x128xf32>
    %c0_58 = arith.constant 0 : index
    %c0_59 = arith.constant 0 : index
    %153 = vector.load %arg11[%c0_58, %c0_59] : memref<128x32xf32, #tpu.memory_space<vmem>>, vector<128x32xf32>
    %cst_60 = arith.constant dense<0.000000e+00> : vector<8x32xf32>
    %154 = tpu.matmul %152, %153, %cst_60 {dimension_numbers = #tpu.dot_dimension_numbers<[1], [0], [0], [1], [0, 0, 1, 1], [], []>} : vector<8x128xf32>, vector<128x32xf32>, vector<8x32xf32> -> vector<8x32xf32>
    %c0_61 = arith.constant 0 : index
    %c0_62 = arith.constant 0 : index
    %155 = vector.load %arg12[%c0_61, %c0_62] : memref<1x32xf32, #tpu.memory_space<vmem>>, vector<1x32xf32>
    %156 = vector.broadcast %155 : vector<1x32xf32> to vector<8x32xf32>
    %157 = arith.addf %154, %156 : vector<8x32xf32>
    %158 = arith.addf %114, %157 : vector<8x32xf32>
    %159 = vector.shape_cast %158 : vector<8x32xf32> to vector<1x8x32xf32>
    %c0_63 = arith.constant 0 : index
    %c0_64 = arith.constant 0 : index
    %c0_65 = arith.constant 0 : index
    %160 = vector.load %arg13[%c0_63, %c0_64, %c0_65] : memref<1x8x32xf32, #tpu.memory_space<vmem>>, vector<1x8x32xf32>
    tpu.vector_store %arg13[%c0_63, %c0_64, %c0_65], %159 {strides = array<i32>} : memref<1x8x32xf32, #tpu.memory_space<vmem>>, vector<1x8x32xf32>,
    return
  }
  func.func @transform_0(%arg0: i32) -> (i32, i32, i32) {
    %c0_i32 = arith.constant 0 : i32
    %c0_i32_0 = arith.constant 0 : i32
    %c0_i32_1 = arith.constant 0 : i32
    return %arg0, %c0_i32, %c0_i32_0 : i32, i32, i32
  }
  func.func @transform_1(%arg0: i32) -> (i32, i32) {
    %c0_i32 = arith.constant 0 : i32
    %c0_i32_0 = arith.constant 0 : i32
    %c0_i32_1 = arith.constant 0 : i32
    return %c0_i32, %c0_i32_0 : i32, i32
  }
  func.func @transform_2(%arg0: i32) -> (i32, i32) {
    %c0_i32 = arith.constant 0 : i32
    %c0_i32_0 = arith.constant 0 : i32
    %c0_i32_1 = arith.constant 0 : i32
    return %c0_i32, %c0_i32_0 : i32, i32
  }
  func.func @transform_3(%arg0: i32) -> (i32, i32) {
    %c0_i32 = arith.constant 0 : i32
    %c0_i32_0 = arith.constant 0 : i32
    %c0_i32_1 = arith.constant 0 : i32
    return %c0_i32, %c0_i32_0 : i32, i32
  }
  func.func @transform_4(%arg0: i32) -> (i32, i32) {
    %c0_i32 = arith.constant 0 : i32
    %c0_i32_0 = arith.constant 0 : i32
    %c0_i32_1 = arith.constant 0 : i32
    return %c0_i32, %c0_i32_0 : i32, i32
  }
  func.func @transform_5(%arg0: i32) -> (i32, i32) {
    %c0_i32 = arith.constant 0 : i32
    %c0_i32_0 = arith.constant 0 : i32
    %c0_i32_1 = arith.constant 0 : i32
    return %c0_i32, %c0_i32_0 : i32, i32
  }
  func.func @transform_6(%arg0: i32) -> (i32, i32) {
    %c0_i32 = arith.constant 0 : i32
    %c0_i32_0 = arith.constant 0 : i32
    %c0_i32_1 = arith.constant 0 : i32
    return %c0_i32, %c0_i32_0 : i32, i32
  }
  func.func @transform_7(%arg0: i32) -> (i32, i32) {
    %c0_i32 = arith.constant 0 : i32
    %c0_i32_0 = arith.constant 0 : i32
    %c0_i32_1 = arith.constant 0 : i32
    return %c0_i32, %c0_i32_0 : i32, i32
  }
  func.func @transform_8(%arg0: i32) -> (i32, i32) {
    %c0_i32 = arith.constant 0 : i32
    %c0_i32_0 = arith.constant 0 : i32
    %c0_i32_1 = arith.constant 0 : i32
    return %c0_i32, %c0_i32_0 : i32, i32
  }
  func.func @transform_9(%arg0: i32) -> (i32, i32) {
    %c0_i32 = arith.constant 0 : i32
    %c0_i32_0 = arith.constant 0 : i32
    %c0_i32_1 = arith.constant 0 : i32
    return %c0_i32, %c0_i32_0 : i32, i32
  }
  func.func @transform_10(%arg0: i32) -> (i32, i32) {
    %c0_i32 = arith.constant 0 : i32
    %c0_i32_0 = arith.constant 0 : i32
    %c0_i32_1 = arith.constant 0 : i32
    return %c0_i32, %c0_i32_0 : i32, i32
  }
  func.func @transform_11(%arg0: i32) -> (i32, i32) {
    %c0_i32 = arith.constant 0 : i32
    %c0_i32_0 = arith.constant 0 : i32
    %c0_i32_1 = arith.constant 0 : i32
    return %c0_i32, %c0_i32_0 : i32, i32
  }
  func.func @transform_12(%arg0: i32) -> (i32, i32, i32) {
    %c0_i32 = arith.constant 0 : i32
    %c0_i32_0 = arith.constant 0 : i32
    %c0_i32_1 = arith.constant 0 : i32
    return %arg0, %c0_i32, %c0_i32_0 : i32, i32, i32
  }
}

</mosaic_0001>

<bundles_post_ra>
// kernel: block_forward.1
= control target key start
LH: loop header
LB: loop body
LE: loop exit
PB: predicated region body
PF: predicated region fallthrough
CT: control target
= control target key end

     0   :  { %s2329_s0 = inlined_call_operand.vmem [shape: f32[2,8,32], index: 0, kind: input, shape index: {}]   ;;  %s2330_s1 = inlined_call_operand.vmem [shape: f32[1,32], index: 1, kind: input, shape index: {}]   ;;  %s2331_s2 = inlined_call_operand.vmem [shape: f32[1,32], index: 2, kind: input, shape index: {}]   ;;  %s2332_s3 = inlined_call_operand.vmem [shape: f32[32,96], index: 3, kind: input, shape index: {}]   ;;  %s2333_s4 = inlined_call_operand.vmem [shape: f32[32,32], index: 4, kind: input, shape index: {}]   ;;  %s2334_s5 = inlined_call_operand.vmem [shape: f32[1,32], index: 5, kind: input, shape index: {}]   ;;  %s2335_s6 = inlined_call_operand.vmem [shape: f32[1,32], index: 6, kind: input, shape index: {}]   ;;  %s2336_s7 = inlined_call_operand.vmem [shape: f32[1,32], index: 7, kind: input, shape index: {}]   ;;  %s2337_s8 = inlined_call_operand.vmem [shape: f32[32,128], index: 8, kind: input, shape index: {}]   ;;  %s2338_s9 = inlined_call_operand.vmem [shape: f32[1,128], index: 9, kind: input, shape index: {}]   ;;  %s2339_s10 = inlined_call_operand.vmem [shape: f32[128,32], index: 10, kind: input, shape index: {}]   ;;  %s2340_s11 = inlined_call_operand.vmem [shape: f32[1,32], index: 11, kind: input, shape index: {}]   ;;  %s2341_s12 = inlined_call_operand.hbm [shape: f32[2,8,32], index: 12, kind: output, shape index: {}]  }
   0x1   :  { %2342 = sst [smem:[#allocation6_spill]] %s2329_s0 }
   0x2   :  { %2343 = sst [smem:[#allocation7_spill]] %s2330_s1 }
   0x3   :  { %17 = vsyncpa [#allocation4], 0 }
   0x4   :  { %19 = vsyncpa [#allocation4 + $0x1], 0  ;;  %s2025_s21 = smov 0   ;;  %s2027_s22 = smov 0  }
   0x5   :  { %s2029_s23 = smov 0   ;;  %s2031_s24 = smov 0  }
   0x6 LB: > { %s2046_s25 = sadd.s32 4294967295, %s1940_s24   ;;  %s1570_s26 = sadd.s32 4294967294, %s1940_s24   ;;  %s1940_s24 = sphi %s2031_s24, %s2351_s24   ;;  %s1936_s23 = sphi %s2029_s23, %s2350_s23   ;;  %s1932_s22 = sphi %s2027_s22, %s2349_s22   ;;  %s1928_s21 = sphi %s2025_s21, %s2348_s21  }
   0x7   : > { %s2050_s27 = sadd.s32 1, %s1940_s24   ;;  %s289_s28 = sadd.s32 1, %s1936_s23 }
   0x8   : > { %s286_s29 = ssub.s32 %s1940_s24, %s2050_s27  ;;  %p299_p0 = scmp.ne.s32.totalorder %s1936_s23, %s1932_s22 }
   0x9   : > { %p287_p1 = scmp.eq.s32.totalorder %s286_s29, 0  ;;  %p300_p2 = scmp.eq.s32.totalorder %s2046_s25, 1 }
   0xa   : > { %p305_p3 = scmp.ne.s32.totalorder %s1932_s22, %s1928_s21  ;;  %p306_p4 = scmp.eq.s32.totalorder %s1570_s26, 1 }
   0xb   : > { %s2061_s30 = scalar_select %p287_p1, %s1936_s23, %s289_s28  }
   0xc   : > { %p2063_p5 = por %p300_p2, %p299_p0  ;;  %p2067_p6 = por %p306_p4, %p305_p3 }
   0xd   : > { %p1573_p7 = scmp.ge.s32.totalorder %s1940_s24, 1  ;;  %p364_p8 = scmp.lt.s32.totalorder %s1940_s24, 3 }
   0xf   : > { %p365_p9 = pnand %p1573_p7, %p364_p8 }
  0x10   : > { %p405_p10 = scmp.lt.s32.totalorder (!%p365_p9), %s2046_s25, 1  ;;  %vm412_vm0 = vcmask (!%p365_p9), 261120   ;;  %s2346_s0 = sld [smem:[#allocation6_spill]] (!%p365_p9)  ;;  %v441_v7 = vld [vmem:[%s2332_s3] sm:$0xff] (!%p365_p9)  ;;  %v442_v8 = vld [vmem:[%s2332_s3 + $0x8] sm:$0xff] (!%p365_p9)  ;;  %v443_v9 = vld [vmem:[%s2332_s3 + $0x10] sm:$0xff] (!%p365_p9) }
  0x11   : > { %368 = sbr.rel (%p365_p9) target bundleno = 2540 (0x9ec), region = 68  ;;  %v1942_v10 = vmov (!%p365_p9), 0.0|0.0   ;;  %v1759_v11 = vpack.c.bf16 (!%p365_p9), %v442_v8, %v441_v7  ;;  %v444_v12 = vld [vmem:[%s2332_s3 + $0x18] sm:$0xff] (!%p365_p9)  ;;  %vm1943_vm1 = vmmov (!%p365_p9), 0   ;;  %v1944_v13 = vmov (!%p365_p9), 0.0   ;;  %s2347_s1 = sld [smem:[#allocation7_spill]] (!%p365_p9) }
  0x12   : > { %1758 = vmatprep.subr.bf16.mxu1 (!%p365_p9), %v1942_v10  ;;  %1658 = vmatprep.mubr.msk.f32.mxu1 (!%p365_p9), %vm1943_vm1, %v1944_v13  ;;  %v1762_v14 = vpack.c.bf16 (!%p365_p9), %v444_v12, %v443_v9  ;;  %v1577_v21 = vld [vmem:[%s2331_s2] ss:$0 sm:$0xff] (!%p365_p9)  ;;  %s1945_s29 = smov (!%p365_p9), 120   ;;  %s1948_s17 = smov (!%p365_p9), 80   ;;  %vm521_vm2 = vcmask (!%p365_p9), 64512   ;;  %vm853_vm3 = vcmask (!%p365_p9), 130112  }
  0x13   : > { %1671 = vmatprep.subr.mxu0 (!%p365_p9), %v1944_v13  ;;  %1673 = vmatprep.mubr.msk.f32.mxu0 (!%p365_p9), %vm1943_vm1, %v1944_v13  ;;  %s1949_s18 = smov (!%p365_p9), 112   ;;  %s1951_s20 = smov (!%p365_p9), 104   ;;  %vm1024_vm4 = vcmask (!%p365_p9), 195712   ;;  %vm1195_vm5 = vcmask (!%p365_p9), 261312  }
  0x14   : > { %1760 = vmatpush3.bf16.msra.mxu1 (!%p365_p9), %v1759_v11  ;;  %s1952_s26 = smov (!%p365_p9), 64   ;;  %s1953_s28 = smov (!%p365_p9), 48  }
  0x15   : > { %1761 = vmatprep.subr.bf16.mxu1 (!%p365_p9), %v1942_v10 }
  0x17   : > { %v1576_v19 = vld [vmem:[%s2347_s1] ss:$0 sm:$0xff] (!%p365_p9) }
  0x18   : > { %s406_s15 = scalar_select %p405_p10, %s2046_s25, 1  ;;  %1763 = vmatpush3.bf16.msra.mxu1 %v1762_v14 }
  0x19   : > { %1661 = vmatprep.subr.mxu1 %v1944_v13 }
  0x1a   : > { %s1575_s16 = sshll.u32 %s406_s15, 3  ;;  %s1946_s15 = smov 96  }
  0x1b   : > { %s408_s19 = scalar_lea.vmem %s2346_s0, %s1575_s16  ;;  %s1947_s16 = smov 88  }
  0x1c   : > { %v2078_v0 = vld [vmem:[%s408_s19] sm:$0xff]  ;;  %s1950_s19 = smov 72   ;;  %s1599_s0 = sshll.u32 %s2046_s25, 7 }
  0x1d   : > { %v413_v1 = vsel %vm412_vm0, %v2078_v0, 0.0 }
  0x1e   : > { %414 = vadd.xlane.f32.xlu0 %v413_v1 }
  0xab   : > { %v415_v2 = vpop.xlane.xlu0 %414 }
  0xac   : > { %v417_v3 = vmul.f32 0.03125, %v415_v2 }
  0xae   : > { %v418_v4 = vsub.f32 %v2078_v0, %v417_v3 }
  0xb0   : > { %v419_v5 = vmul.f32 %v418_v4, %v418_v4 }
  0xb2   : > { %v420_v6 = vsel %vm412_vm0, %v419_v5, 0.0 }
  0xb3   : > { %421 = vadd.xlane.f32.xlu0 %v420_v6 }
 0x140   : > { %v422_v15 = vpop.xlane.xlu0 %421 }
 0x141   : > { %v423_v16 = vmul.f32 0.03125, %v422_v15 }
 0x143   : > { %v424_v17 = vadd.f32 1e-05, %v423_v16 }
 0x145   : > { %1856 = vrsqrt.f32 %v424_v17 }
 0x14f   : > { %v1857_v18 = vpop.eup %1856 }
 0x150   : > { %v426_v20 = vmul.f32 %v1857_v18, %v418_v4 }
 0x152   : > { %v433_v22 = vmul.f32 %v1576_v19, %v426_v20 }
 0x154   : > { %v440_v23 = vadd.f32 %v1577_v21, %v433_v22  ;;  %v1198_v22 = vld [vmem:[%s2333_s4] sm:$0xff] }
 0x156   : > { %1659 = vmatmul.mubr.msk.f32.vlgmr.msra.gmra.mrb[0].mxu1 %vm412_vm0, %v440_v23  ;;  %v1199_v23 = vld [vmem:[%s2333_s4 + $0x8] sm:$0xff] }
 0x157   : > { %1663 = vmatprep.mubr.msk.f32.mxu1 %vm1943_vm1, %v1944_v13 }
 0x229   : > { %v2113_v24 = vpop.f32.mrb[0].mxu1 }
 0x22a   : > { %684 = vrot.lane.b32.xlu0 %v2113_v24, %s1945_s29  ;;  %519 = vrot.lane.b32.xlu1 %v2113_v24, %s1946_s15  ;;  %v1660_v25 = vpop.f32.mrb[1].mxu1  ;;  %s1954_s29 = smov 40   ;;  %s1955_s15 = smov 56  }
 0x22b   : > { %v1200_v25 = vld [vmem:[%s2333_s4 + $0x10] sm:$0xff] }
 0x22e   : > { %686 = vrot.lane.b32.xlu1 %v2113_v24, %s1947_s16  ;;  %s1957_s16 = smov 16  }
 0x232   : > { %857 = vrot.lane.b32.xlu1 %v2113_v24, %s1948_s17  ;;  %s1958_s17 = smov 24  }
 0x236   : > { %855 = vrot.lane.b32.xlu1 %v2113_v24, %s1949_s18 }
 0x23a   : > { %1028 = vrot.lane.b32.xlu1 %v2113_v24, %s1950_s19 }
 0x23e   : > { %1026 = vrot.lane.b32.xlu1 %v2113_v24, %s1951_s20 }
 0x29c   : > { %v520_v26 = vpop.permute.xlu1 %519  ;;  %v685_v28 = vpop.permute.xlu0 %684 }
 0x29d   : > { %1662 = vmatpush3.xpose.msk.msra.mxu1 %vm521_vm2, %v520_v26  ;;  %v1201_v26 = vld [vmem:[%s2333_s4 + $0x18] sm:$0xff] }
 0x29e   : > { %1666 = vmatprep.subr.mxu1 %v1944_v13 }
 0x2a0   : > { %1664 = vmatmul.mubr.msk.f32.vlgmr.msra.gmra.mrb[2].mxu1 %vm521_vm2, %v2113_v24  ;;  %v687_v27 = vpop.permute.xlu1 %686 }
 0x2a1   : > { %1672 = vmatpush3.xpose.msk.msra.mxu0 %vm521_vm2, %v687_v27  ;;  %1668 = vmatprep.mubr.msk.f32.mxu1 %vm1943_vm1, %v1944_v13  ;;  %v1768_v27 = vpack.c.bf16 %v1201_v26, %v1200_v25  ;;  %v1595_v25 = vld [vmem:[%s2338_s9] ss:$0 sm:$0xff] }
 0x2a2   : > { %1681 = vmatprep.subr.mxu0 %v1944_v13 }
 0x2a4   : > { %1674 = vmatmul.mubr.msk.f32.vlgmr.msra.gmra.mrb[0].mxu0 %vm521_vm2, %v685_v28  ;;  %v858_v29 = vpop.permute.xlu1 %857 }
 0x2a5   : > { %1682 = vmatpush3.xpose.msk.msra.mxu0 %vm521_vm2, %v858_v29  ;;  %1683 = vmatprep.mubr.msk.f32.mxu0 %vm1943_vm1, %v1944_v13 }
 0x2a6   : > { %1691 = vmatprep.subr.mxu0 %v1944_v13 }
 0x2a8   : > { %v856_v30 = vpop.permute.xlu1 %855 }
 0x2a9   : > { %1684 = vmatmul.mubr.msk.f32.vlgmr.msra.gmra.mrb[2].mxu0 %vm521_vm2, %v856_v30 }
 0x2aa   : > { %1693 = vmatprep.mubr.msk.f32.mxu0 %vm1943_vm1, %v1944_v13 }
 0x2ac   : > { %v1029_v31 = vpop.permute.xlu1 %1028 }
 0x2ad   : > { %1692 = vmatpush3.xpose.msk.msra.mxu0 %vm521_vm2, %v1029_v31 }
 0x2ae   : > { %1776 = vmatprep.subr.bf16.mxu0 %v1942_v10 }
 0x2b0   : > { %v1027_v32 = vpop.permute.xlu1 %1026 }
 0x2b1   : > { %1694 = vmatmul.mubr.msk.f32.vlgmr.msra.gmra.mrb[4].mxu0 %vm521_vm2, %v1027_v32 }
 0x2b2   : > { %1755 = vmatprep.mubr.msk.f32.mxu0 %vm1943_vm1, %v1944_v13 }
 0x373   : > { %v592_v33 = vpop.f32.mrb[2].mxu1 }
 0x374   : > { %v1665_v34 = vpop.f32.mrb[3].mxu1  ;;  %v596_v35 = vsel %vm521_vm2, %v592_v33, -inf }
 0x375   : > { %597 = vmax.xlane.f32.xlu1 %v596_v35 }
 0x377   : > { %v758_v36 = vpop.f32.mrb[0].mxu0 }
 0x378   : > { %v1675_v37 = vpop.f32.mrb[1].mxu0  ;;  %v762_v38 = vsel %vm521_vm2, %v758_v36, -inf }
 0x379   : > { %763 = vmax.xlane.f32.xlu0 %v762_v38  ;;  %v1591_v38 = vld [vmem:[%s2334_s5] ss:$0 sm:$0xff] }
 0x37c   : > { %v929_v39 = vpop.f32.mrb[2].mxu0 }
 0x37d   : > { %v1685_v40 = vpop.f32.mrb[3].mxu0  ;;  %v933_v41 = vsel %vm521_vm2, %v929_v39, -inf }
 0x37e   : > { %934 = vmax.xlane.f32.xlu1 %v933_v41 }
 0x384   : > { %v1100_v42 = vpop.f32.mrb[4].mxu0 }
 0x385   : > { %v1695_v43 = vpop.f32.mrb[5].mxu0  ;;  %v1104_v44 = vsel %vm521_vm2, %v1100_v42, -inf }
 0x386   : > { %1105 = vmax.xlane.f32.xlu0 %v1104_v44 }
 0x38f   : > { %607 = vrot.lane.b32.xlu1 %v2113_v24, %s1952_s26 }
 0x402   : > { %v598_v45 = vpop.xlane.xlu1 %597 }
 0x403   : > { %v599_v46 = vsub.f32 %v592_v33, %v598_v45 }
 0x405   : > { %v600_v47 = vmul.f32 1.442695, %v599_v46 }
 0x406   : > { %v764_v48 = vpop.xlane.xlu0 %763 }
 0x407   : > { %1858 = vpow2.f32 %v600_v47  ;;  %v765_v49 = vsub.f32 %v758_v36, %v764_v48  ;;  %v1312_v48 = vld [vmem:[%s2337_s8] sm:$0xff] }
 0x409   : > { %v766_v50 = vmul.f32 1.442695, %v765_v49 }
 0x40b   : > { %1860 = vpow2.f32 %v766_v50  ;;  %v935_v51 = vpop.xlane.xlu1 %934  ;;  %v1314_v50 = vld [vmem:[%s2337_s8 + $0x10] sm:$0xff] }
 0x40c   : > { %v936_v52 = vsub.f32 %v929_v39, %v935_v51  ;;  %v1315_v51 = vld [vmem:[%s2337_s8 + $0x18] sm:$0xff] }
 0x40e   : > { %v937_v53 = vmul.f32 1.442695, %v936_v52  ;;  %v1774_v52 = vpack.c.bf16 %v1315_v51, %v1314_v50 }
 0x40f   : > { %v608_v54 = vpop.permute.xlu1 %607 }
 0x410   : > { %1862 = vpow2.f32 %v937_v53  ;;  %1667 = vmatpush3.msra.mxu1 %v608_v54  ;;  %v1402_v53 = vld [vmem:[%s2339_s10] sm:$0xff]  ;;  %v1403_v54 = vld [vmem:[%s2339_s10 + $0x8] sm:$0xff] }
 0x411   : > { %v1859_v55 = vpop.eup %1858  ;;  %1676 = vmatprep.subr.mxu1 %v1944_v13 }
 0x412   : > { %v602_v56 = vsel %vm521_vm2, %v1859_v55, 0.0 }
 0x413   : > { %v1106_v57 = vpop.xlane.xlu0 %1105  ;;  %603 = vadd.xlane.f32.xlu1 %v602_v56  ;;  %v1777_v56 = vpack.c.bf16 %v1403_v54, %v1402_v53 }
 0x414   : > { %v1107_v58 = vsub.f32 %v1100_v42, %v1106_v57  ;;  %v1405_v57 = vld [vmem:[%s2339_s10 + $0x18] sm:$0xff] }
 0x415   : > { %v1861_v59 = vpop.eup %1860  ;;  %1778 = vmatpush3.bf16.msra.mxu0 %v1777_v56 }
 0x416   : > { %v1108_v60 = vmul.f32 1.442695, %v1107_v58  ;;  %v768_v61 = vsel %vm521_vm2, %v1861_v59, 0.0  ;;  %1779 = vmatprep.subr.bf16.mxu0 %v1942_v10 }
 0x417   : > { %769 = vadd.xlane.f32.xlu0 %v768_v61 }
 0x418   : > { %1864 = vpow2.f32 %v1108_v60  ;;  %v1407_v60 = vld [vmem:[%s2339_s10 + $0x28] sm:$0xff] }
 0x41a   : > { %v1863_v62 = vpop.eup %1862 }
 0x41b   : > { %v939_v63 = vsel %vm521_vm2, %v1863_v62, 0.0 }
 0x41c   : > { %940 = vadd.xlane.f32.xlu1 %v939_v63 }
 0x422   : > { %v1865_v1 = vpop.eup %1864 }
 0x423   : > { %v1110_v2 = vsel %vm521_vm2, %v1865_v1, 0.0 }
 0x424   : > { %1111 = vadd.xlane.f32.xlu0 %v1110_v2 }
 0x42d   : > { %944 = vrot.lane.b32.xlu1 %v2113_v24, %s1953_s28 }
 0x431   : > { %1115 = vrot.lane.b32.xlu1 %v2113_v24, %s1954_s29 }
 0x43a   : > { %773 = vrot.lane.b32.xlu0 %v2113_v24, %s1955_s15  ;;  %v1765_v24 = vpack.c.bf16 %v1199_v23, %v1198_v22  ;;  %s1956_s15 = smov 8   ;;  %v1416_v22 = vld [vmem:[%s2339_s10 + $0x70] sm:$0xff]  ;;  %v1417_v23 = vld [vmem:[%s2339_s10 + $0x78] sm:$0xff] }
 0x4a0   : > { %v604_v3 = vpop.xlane.xlu1 %603 }
 0x4a1   : > { %1866 = vrcp.f32 %v604_v3  ;;  %v1593_v3 = vld [vmem:[%s2335_s6] ss:$0 sm:$0xff] }
 0x4a4   : > { %v770_v4 = vpop.xlane.xlu0 %769 }
 0x4a5   : > { %1868 = vrcp.f32 %v770_v4 }
 0x4a9   : > { %v941_v5 = vpop.xlane.xlu1 %940 }
 0x4aa   : > { %1870 = vrcp.f32 %v941_v5  ;;  %v1594_v5 = vld [vmem:[%s2336_s7] ss:$0 sm:$0xff] }
 0x4ab   : > { %v1867_v6 = vpop.eup %1866 }
 0x4ac   : > { %v606_v7 = vmul.f32 %v1867_v6, %v1859_v55  ;;  %v1404_v55 = vld [vmem:[%s2339_s10 + $0x10] sm:$0xff] }
 0x4ad   : > { %v945_v12 = vpop.permute.xlu1 %944  ;;  %v1780_v58 = vpack.c.bf16 %v1405_v57, %v1404_v55 }
 0x4ae   : > { %1669 = vmatmul.mubr.msk.f32.vlgmr.msra.gmra.mrb[4].mxu1 %vm521_vm2, %v606_v7 }
 0x4af   : > { %1678 = vmatprep.mubr.msk.f32.mxu1 %vm1943_vm1, %v1944_v13  ;;  %v1869_v9 = vpop.eup %1868  ;;  %1781 = vmatpush3.bf16.msra.mxu0 %v1780_v58 }
 0x4b0   : > { %v772_v11 = vmul.f32 %v1869_v9, %v1861_v59  ;;  %v1406_v59 = vld [vmem:[%s2339_s10 + $0x20] sm:$0xff]  ;;  %1782 = vmatprep.subr.bf16.mxu0 %v1942_v10  ;;  %v1409_v9 = vld [vmem:[%s2339_s10 + $0x38] sm:$0xff] }
 0x4b1   : > { %v1112_v8 = vpop.xlane.xlu0 %1111  ;;  %v1116_v17 = vpop.permute.xlu1 %1115  ;;  %v1783_v61 = vpack.c.bf16 %v1407_v60, %v1406_v59 }
 0x4b2   : > { %1872 = vrcp.f32 %v1112_v8  ;;  %v1408_v8 = vld [vmem:[%s2339_s10 + $0x30] sm:$0xff] }
 0x4b3   : > { %1784 = vmatpush3.bf16.msra.mxu0 %v1783_v61 }
 0x4b4   : > { %v1871_v15 = vpop.eup %1870  ;;  %1785 = vmatprep.subr.bf16.mxu0 %v1942_v10 }
 0x4b5   : > { %v774_v14 = vpop.permute.xlu0 %773  ;;  %v943_v16 = vmul.f32 %v1871_v15, %v1863_v62 }
 0x4b6   : > { %1677 = vmatpush3.msra.mxu1 %v774_v14  ;;  %v1411_v14 = vld [vmem:[%s2339_s10 + $0x48] sm:$0xff] }
 0x4b7   : > { %1679 = vmatmul.mubr.msk.f32.vlgmr.msra.gmra.mrb[6].mxu1 %vm521_vm2, %v772_v11  ;;  %1686 = vmatprep.subr.mxu1 %v1944_v13  ;;  %v1786_v11 = vpack.c.bf16 %v1409_v9, %v1408_v8 }
 0x4b8   : > { %1687 = vmatpush3.msra.mxu1 %v945_v12  ;;  %1688 = vmatprep.mubr.msk.f32.mxu1 %vm1943_vm1, %v1944_v13  ;;  %v1410_v12 = vld [vmem:[%s2339_s10 + $0x40] sm:$0xff] }
 0x4b9   : > { %1696 = vmatprep.subr.mxu1 %v1944_v13  ;;  %1787 = vmatpush3.bf16.msra.mxu0 %v1786_v11  ;;  %v1789_v15 = vpack.c.bf16 %v1411_v14, %v1410_v12 }
 0x4ba   : > { %1788 = vmatprep.subr.bf16.mxu0 %v1942_v10 }
 0x4bb   : > { %1689 = vmatmul.mubr.msk.f32.vlgmr.msra.gmra.mrb[8].mxu1 %vm521_vm2, %v943_v16  ;;  %v1412_v16 = vld [vmem:[%s2339_s10 + $0x50] sm:$0xff] }
 0x4bc   : > { %v1873_v18 = vpop.eup %1872  ;;  %1697 = vmatpush3.msra.mxu1 %v1116_v17  ;;  %1698 = vmatprep.mubr.msk.f32.mxu1 %vm1943_vm1, %v1944_v13  ;;  %v1413_v17 = vld [vmem:[%s2339_s10 + $0x58] sm:$0xff] }
 0x4bd   : > { %v1114_v19 = vmul.f32 %v1873_v18, %v1865_v1  ;;  %1764 = vmatprep.subr.bf16.mxu1 %v1942_v10  ;;  %1790 = vmatpush3.bf16.msra.mxu0 %v1789_v15  ;;  %v1792_v18 = vpack.c.bf16 %v1413_v17, %v1412_v16 }
 0x4be   : > { %1791 = vmatprep.subr.bf16.mxu0 %v1942_v10 }
 0x4bf   : > { %1699 = vmatmul.mubr.msk.f32.vlgmr.msra.gmra.mrb[10].mxu1 %vm521_vm2, %v1114_v19  ;;  %v1414_v19 = vld [vmem:[%s2339_s10 + $0x60] sm:$0xff] }
 0x4c0   : > { %1709 = vmatprep.mubr.msk.f32.mxu1 %vm1943_vm1, %v1944_v13  ;;  %1766 = vmatpush3.bf16.msra.mxu1 %v1765_v24  ;;  %v1798_v24 = vpack.c.bf16 %v1417_v23, %v1416_v22 }
 0x4c1   : > { %1767 = vmatprep.subr.bf16.mxu1 %v1942_v10  ;;  %1793 = vmatpush3.bf16.msra.mxu0 %v1792_v18 }
 0x4c2   : > { %1794 = vmatprep.subr.bf16.mxu0 %v1942_v10 }
 0x4c4   : > { %1769 = vmatpush3.bf16.msra.mxu1 %v1768_v27 }
 0x4c5   : > { %1770 = vmatprep.subr.bf16.mxu1 %v1942_v10 }
 0x581   : > { %v679_v20 = vpop.f32.mrb[4].mxu1 }
 0x582   : > { %683 = vst.msk [vmem:[#allocation2] sm:$0xff] %vm521_vm2, %v679_v20  ;;  %v1670_v21 = vpop.f32.mrb[5].mxu1  ;;  %v1415_v20 = vld [vmem:[%s2339_s10 + $0x68] sm:$0xff] }
 0x583   : > { %v1795_v21 = vpack.c.bf16 %v1415_v20, %v1414_v19 }
 0x585   : > { %1796 = vmatpush3.bf16.msra.mxu0 %v1795_v21 }
 0x586   : > { %1797 = vmatprep.subr.bf16.mxu0 %v1942_v10 }
 0x589   : > { %1799 = vmatpush3.bf16.msra.mxu0 %v1798_v24 }
 0x58a   : > { %v845_v28 = vpop.f32.mrb[6].mxu1 }
 0x58b   : > { %850 = vrot.lane.b32.xlu0 %v845_v28, %s1956_s15  ;;  %v1680_v29 = vpop.f32.mrb[7].mxu1 }
 0x58e   : > { %v1016_v30 = vpop.f32.mrb[8].mxu1 }
 0x58f   : > { %1021 = vrot.lane.b32.xlu1 %v1016_v30, %s1957_s16  ;;  %v1690_v31 = vpop.f32.mrb[9].mxu1  ;;  %s2286_s16 = scalar_lea.hbm %s2341_s12, %s1599_s0 }
 0x592   : > { %v1187_v32 = vpop.f32.mrb[10].mxu1 }
 0x593   : > { %1192 = vrot.lane.b32.xlu0 %v1187_v32, %s1958_s17  ;;  %v1700_v33 = vpop.f32.mrb[11].mxu1  ;;  %s402_s17 = sand.u32 1, %s1932_s22  }
 0x594   : > { %s1574_s18 = sshll.u32 %s402_s17, 3  ;;  %v1597_v33 = vld [vmem:[%s2340_s11] ss:$0 sm:$0xff]  ;;  %s1498_s19 = scalar_lea.sflag [#allocation4], %s402_s17 }
 0x595   : > { %s404_s26 = scalar_lea.vmem [#allocation3], %s1574_s18  ;;  %s1959_s18 = smov [#allocation3]  }
 0x596   : > { %s1511_s28 = sshll.u32 %s404_s26, 4  ;;  %s1882_s20 = sshll.u32 %s1959_s18, 4  ;;  %s2288_s28 = int_to_ptr.vmem [resolvable:$true] %s1511_s28  ;;  %s1883_s20 = int_to_ptr.vmem [resolvable:$false] %s1882_s20 }
 0x597   : > { %s1878_s25 = scalar_lea.vmem %s2288_s28, 128  ;;  %s1884_s1 = scalar_lea.vmem %s1883_s20, 256 }
 0x598   : > { %p1879_p11 = scmp.ne.s32.totalorder %s2288_s28, %s1878_s25  ;;  %p1885_p0 = scmp.lt.s32.totalorder %s2288_s28, %s1883_s20 }
 0x599   : > { %p1886_p1 = scmp.lt.s32.totalorder %s1884_s1, %s1878_s25 }
 0x59a   : > { %p1880_p12 = pnand %p1879_p11, %p2063_p5 }
 0x59b   : > { %p1887_p2 = por %p1886_p1, %p1885_p0 }
 0x59c   : > { %p1881_p13 = pneg %p1880_p12 }
 0x59e   : > { %p1888_p3 = pnand %p1887_p2, %p1881_p13 }
 0x5fd   : > { %v851_v34 = vpop.permute.xlu0 %850 }
 0x5fe   : > { %854 = vst.msk [vmem:[#allocation2] sm:$0xff] %vm853_vm3, %v851_v34 }
 0x601   : > { %v1022_v35 = vpop.permute.xlu1 %1021 }
 0x602   : > { %1025 = vst.msk [vmem:[#allocation2] sm:$0xff] %vm1024_vm4, %v1022_v35 }
 0x605   : > { %v1193_v36 = vpop.permute.xlu0 %1192 }
 0x606   : > { %1196 = vst.msk [vmem:[#allocation2] sm:$0xff] %vm1195_vm5, %v1193_v36 }
 0x60d   : > { %v1197_v37 = vld [vmem:[#allocation2] sm:$0xff] }
 0x60e   : > { %1710 = vmatmul.mubr.msk.f32.vlgmr.msra.gmra.mrb[12].mxu1 %vm412_vm0, %v1197_v37 }
 0x60f   : > { %1720 = vmatprep.mubr.msk.f32.mxu1 %vm1943_vm1, %v1944_v13 }
 0x6e1   : > { %v1278_v39 = vpop.f32.mrb[12].mxu1 }
 0x6e2   : > { %v1279_v40 = vadd.f32 %v1591_v38, %v1278_v39  ;;  %v1711_v41 = vpop.f32.mrb[13].mxu1 }
 0x6e4   : > { %v2193_v42 = vadd.f32 %v1279_v40, %v2078_v0  ;;  %v1313_v0 = vld [vmem:[%s2337_s8 + $0x8] sm:$0xff] }
 0x6e5   : > { %v1771_v49 = vpack.c.bf16 %v1313_v0, %v1312_v48 }
 0x6e6   : > { %v1285_v43 = vsel %vm412_vm0, %v2193_v42, 0.0 }
 0x6e7   : > { %1286 = vadd.xlane.f32.xlu1 %v1285_v43  ;;  %1772 = vmatpush3.bf16.msra.mxu1 %v1771_v49 }
 0x6e8   : > { %1773 = vmatprep.subr.bf16.mxu1 %v1942_v10 }
 0x6eb   : > { %1775 = vmatpush3.bf16.msra.mxu1 %v1774_v52 }
 0x774   : > { %v1287_v44 = vpop.xlane.xlu1 %1286 }
 0x775   : > { %v1288_v45 = vmul.f32 0.03125, %v1287_v44 }
 0x777   : > { %v1289_v46 = vsub.f32 %v2193_v42, %v1288_v45 }
 0x779   : > { %v1290_v47 = vmul.f32 %v1289_v46, %v1289_v46 }
 0x77b   : > { %v1291_v13 = vsel %vm412_vm0, %v1290_v47, 0.0 }
 0x77c   : > { %1292 = vadd.xlane.f32.xlu0 %v1291_v13 }
 0x809   : > { %v1293_v62 = vpop.xlane.xlu0 %1292 }
 0x80a   : > { %v1294_v63 = vmul.f32 0.03125, %v1293_v62 }
 0x80c   : > { %v1295_v1 = vadd.f32 1e-05, %v1294_v63 }
 0x80e   : > { %1874 = vrsqrt.f32 %v1295_v1 }
 0x818   : > { %v1875_v2 = vpop.eup %1874 }
 0x819   : > { %v1297_v4 = vmul.f32 %v1875_v2, %v1289_v46 }
 0x81b   : > { %v1304_v6 = vmul.f32 %v1593_v3, %v1297_v4 }
 0x81d   : > { %v1311_v7 = vadd.f32 %v1594_v5, %v1304_v6 }
 0x81f   : > { %1721 = vmatmul.mubr.msk.f32.vlgmr.msra.gmra.mrb[14].mxu1 %vm412_vm0, %v1311_v7 }
 0x8f2   : > { %v1392_v26 = vpop.f32.mrb[14].mxu1 }
 0x8f3   : > { %v1393_v27 = vadd.f32 %v1595_v25, %v1392_v26  ;;  %v1722_v28 = vpop.f32.mrb[15].mxu1 }
 0x8f5   : > { %v1398_v10 = vmul.f32 0.70710677, %v1393_v27  ;;  %v1396_v30 = vmul.f32 0.5, %v1393_v27 }
 0x8f7   : > { %1876 = verf.f32 %v1398_v10 }
 0x901   : > { %v1877_v29 = vpop.eup %1876 }
 0x902   : > { %v1400_v31 = vadd.f32 1.0, %v1877_v29 }
 0x904   : > { %v1401_v32 = vmul.f32 %v1400_v31, %v1396_v30 }
 0x906   : > { %1756 = vmatmul.mubr.f32.vlgmr.msra.gmra.mrb[6].mxu0 %v1401_v32 }
 0x9d9   : > { %v1491_v34 = vpop.f32.mrb[6].mxu0 }
 0x9da   : > { %v1492_v35 = vadd.f32 %v1597_v33, %v1491_v34  ;;  %v1757_v36 = vpop.f32.mrb[7].mxu0 }
 0x9dc   : > { %v1495_v37 = vadd.f32 %v1492_v35, %v2193_v42 }
 0x9de   : > { %1496 = vst.msk [vmem:[%s404_s26] sm:$0xff] %vm412_vm0, %v1495_v37 }
 0x9df   : > { %1891 = shalt.err (!%p1888_p3)
}
 0x9e0   : > { %s1892_s17 = scalar_lea.hbm %s2286_s16, 128  ;;  %s1896_s29 = scalar_lea.hbm %s2341_s12, 256 }
 0x9e1   : > { %p1893_p4 = scmp.ne.s32.totalorder %s2286_s16, %s1892_s17  ;;  %p1897_p9 = scmp.lt.u32.totalorder %s2286_s16, %s2341_s12 }
 0x9e2   : > { %p1898_p10 = scmp.lt.u32.totalorder %s1896_s29, %s1892_s17  ;;  %p1900_p12 = scmp.lt.u32.totalorder %s1892_s17, %s2286_s16 }
 0x9e3   : > { %p1894_p7 = pnand %p1893_p4, %p2063_p5 }
 0x9e4   : > { %p1899_p11 = por %p1898_p10, %p1897_p9 }
 0x9e5   : > { %p1895_p8 = pneg %p1894_p7 }
 0x9e6   : > { %p1901_p13 = por %p1900_p12, %p1899_p11 }
 0x9e8   : > { %p1902_p0 = pnand %p1901_p13, %p1895_p8 }
 0x9ea   : > { %1905 = shalt.err (!%p1902_p0)
}
 0x9eb   : > { %1800 = dma.vmem_to_hbm [thread:$0]  (%p2063_p5), %s2288_s28, 128, %s2286_s16, %s1498_s19  }
 0x9ec PF: > { %p1806_p1 = scmp.ge.s32.totalorder %s1940_s24, 2  ;;  %s1523_s1 = sand.u32 1, %s1928_s21  }
 0x9ed   : > { %s1524_s25 = scalar_lea.sflag [#allocation4], %s1523_s1 }
 0x9ee   : > { %p1803_p2 = pnand %p1806_p1, %p2067_p6 }
 0x9f0   : > { %1923 = dma.done.wait (!%p1803_p2), %s1524_s25, 128  }
 0x9f1   : > { %1925 = vsyncadd (!%p1803_p2), %s1524_s25, 4294967168  ;;  %p22_p3 = scmp.ge.s32.totalorder %s2050_s27, 4   ;;  %s2348_s21 = smov %s1932_s22 }
 0x9f2   : > { %s2349_s22 = smov %s1936_s23  ;;  %s2350_s23 = smov %s2061_s30 }
 0x9f3   : > { %s2351_s24 = smov %s2050_s27  ;;  %24 = sbr.rel (!%p22_p3) target bundleno = 6 (0x6), region = 103 }
 0x9fa   :  { %1529 = vsyncpa [#allocation4], 1 }
 0x9fb   :  { %1531 = vsyncpa [#allocation4 + $0x1], 1 }

</bundles_post_ra>
